<compile_context>
chip_gen: v6e
topology: v6e:2x2x1
jax: 0.10.0
libtpu: 0.0.40
codegen_flags: <defaults>
</compile_context>

<pallas_src>
import functools
import math

import jax
import jax.numpy as jnp
from jax.experimental import pallas as pl
from jax.experimental.pallas import tpu as pltpu

BACKOFF_PROB = 1e-10
_NEG_BIG = -1e30   # f32 bias for padded noise columns: softplus(-1e30) == 0 exactly.
                   # NOTE: must stay float32 — do not downcast nbias to bf16.


def _round_up(x, m):
    return (x + m - 1) // m * m


def _softplus(z):
    # stable softplus; BCEWithLogits(z, label=0) == softplus(z), label=1 -> softplus(-z)
    return jnp.maximum(z, 0.0) + jnp.log1p(jnp.exp(-jnp.abs(z)))


def _pick_tile_and_vmem(BN, H, Kp, x_bytes, w_bytes):
    """Generation-aware row-tile size and VMEM limit (~75% of physical VMEM)."""
    try:
        info = pltpu.get_tpu_info()
        vmem_cap = int(getattr(info, "vmem_capacity_bytes", 0)) or (64 << 20)
    except Exception:                       # conservative (v7x-sized) fallback
        vmem_cap = 64 << 20
    budget = max((vmem_cap * 3) // 4, 32 << 20)     # compiler-internal headroom

    # tile-independent residents: double-buffered noise matrix + bias + slack
    resident = 2 * (H * Kp * 2) + 2 * (Kp * 4) + (2 << 20)
    # per-row: x (double-buffered) + gathered W rows + in-kernel f32/bf16 copies for
    # the target dot & MXU operand + f32 (1,Kp) logit/softplus intermediates.
    per_row = H * (2 * x_bytes + w_bytes + 4 + 2) + 12 * Kp + 16

    tile = (budget - resident) // per_row
    tile = max(16, min(2048, (tile // 16) * 16))    # multiple of 16 (bf16 sublanes)
    tile = min(tile, _round_up(BN, 16))
    return int(tile), int(budget)


def _nce_kernel(tgt_ref, x_ref, tbias_ref, nwt_ref, nbias_ref, w_hbm,
                out_ref, tw_buf, sem, *, K, tile_bn, fold_target):
    """One tile_bn-row tile of the NCE loss.

    tgt_ref   : (BNp,)   i32 SMEM (scalar prefetch): flat target word ids
    x_ref     : (T, H)   hidden states (native dtype; cast in-kernel)
    tbias_ref : (T, 1)   f32 fused per-row bias  = b[t] - logP_n(t) - lnZ - log k
    nwt_ref   : (H, Kp)  bf16 W[noise]^T, VMEM-resident (constant index_map)
    nbias_ref : (1, Kp)  f32 fused noise bias; padded cols hold -1e30
    w_hbm     : (V, H)   full embedding matrix, left in HBM (memory_space=ANY)
    out_ref   : (T, 1)   f32 per-row loss
    tw_buf    : (T, H)   VMEM scratch for the DMA-gathered W[target] rows
    sem       : (1,)     DMA semaphore for the row gather
    """
    i = pl.program_id(0)
    base = i * tile_bn

    # (1) issue the W[target] row-gather DMAs for this tile as early as possible;
    #     they overlap the noise-path matmul below and the pipeline's next x fetch.
    def _issue(r, carry):
        row = tgt_ref[base + r]
        pltpu.make_async_copy(w_hbm.at[pl.ds(row, 1), :],
                              tw_buf.at[pl.ds(r, 1), :],
                              sem.at[0]).start()
        return carry
    jax.lax.fori_loop(0, tile_bn, _issue, 0)

    # (2) noise path (independent of the gather): bf16 MXU matmul, f32 accumulation.
    x = x_ref[...]
    z_n = (jnp.dot(x.astype(nwt_ref.dtype), nwt_ref[...],
                   preferred_element_type=jnp.float32)
           + nbias_ref[...])                                        # (T, Kp) f32

    # (3) wait for the gathered rows, then the per-row target logit in f32
    #     (W rows arrive at full precision, matching the PyTorch f32 target path).
    def _wait(r, carry):
        row = tgt_ref[base + r]
        pltpu.make_async_copy(w_hbm.at[pl.ds(row, 1), :],
                              tw_buf.at[pl.ds(r, 1), :],
                              sem.at[0]).wait()
        return carry
    jax.lax.fori_loop(0, tile_bn, _wait, 0)

    z_t = (jnp.sum(tw_buf[...].astype(jnp.float32) * x.astype(jnp.float32),
                   axis=-1, keepdims=True)
           + tbias_ref[...])                                        # (T, 1) f32

    if fold_target:
        # Fold the target term into padded noise column K: the lane-sparse (T,1)
        # softplus disappears into the lane-dense (T,Kp) one.
        col = jax.lax.broadcasted_iota(jnp.int32, z_n.shape, 1)
        z_all = jnp.where(col == K, -z_t, z_n)
        out_ref[...] = jnp.sum(_softplus(z_all), axis=-1, keepdims=True)
    else:
        # Kp == K: no spare padded column, keep the (T,1) target softplus.
        out_ref[...] = _softplus(-z_t) + jnp.sum(_softplus(z_n), axis=-1,
                                                 keepdims=True)


def nce_loss_pallas(hidden, target, noise_idx, W, b, logprob_noise,
                    norm_term, noise_ratio, reduction='elementwise_mean',
                    tile_bn=None, compute_dtype=jnp.bfloat16):
    """NCE loss forward (loss_type='nce', training=True, per_word=False)."""
    B, N, H = hidden.shape
    K = int(noise_idx.shape[-1])
    BN = B * N
    log_k = math.log(noise_ratio)

    # --- geometry --------------------------------------------------------------
    Kp = _round_up(K, 128)          # lane-dense noise width
    # TODO(synk): when MXU-bound (large K), round Kp to 256 on v6e/v7x and add an inner
    # 'arbitrary' grid axis over Kp chunks with an f32 accumulator so a huge resident
    # W[noise]^T never has to fit in VMEM (needed on v7x's 64 MiB for K in the 1000s).
    fold_target = Kp > K            # spare padded column available for the target term

    x_bytes = jnp.dtype(hidden.dtype).itemsize
    w_bytes = jnp.dtype(W.dtype).itemsize
    auto_tile, vmem_limit = _pick_tile_and_vmem(BN, H, Kp, x_bytes, w_bytes)
    tile = auto_tile if tile_bn is None else tile_bn
    tile = max(16, min(_round_up(tile, 16), _round_up(BN, 16)))
    num_tiles = -(-BN // tile)
    BNp = num_tiles * tile

    # --- tiny wrapper-side glue (no O(BN*H) passes) ------------------------------
    tflat = target.reshape(BN).astype(jnp.int32)
    shift = norm_term + log_k
    tbias = (b[tflat] - logprob_noise[tflat] - shift).astype(jnp.float32).reshape(BN, 1)
    tgt_pad = jnp.pad(tflat, (0, BNp - BN)) if BNp != BN else tflat   # int32 only

    nwt = W[noise_idx].astype(compute_dtype).T                        # (H, K): K rows only
    nbias = (b[noise_idx] - logprob_noise[noise_idx] - shift).astype(jnp.float32)
    if Kp != K:   # zero weight columns + -1e30 f32 bias => softplus contributes 0
        nwt = jnp.pad(nwt, ((0, 0), (0, Kp - K)))
        nbias = jnp.pad(nbias, (0, Kp - K), constant_values=_NEG_BIG)
    nbias = nbias.reshape(1, Kp)

    x2d = hidden.reshape(BN, H)     # native dtype; kernel casts per path (no HBM pass)

    kernel = functools.partial(_nce_kernel, K=K, tile_bn=tile, fold_target=fold_target)

    grid_spec = pltpu.PrefetchScalarGridSpec(
        num_scalar_prefetch=1,            # flat target ids -> SMEM
        grid=(num_tiles,),
        in_specs=[
            pl.BlockSpec((tile, H), lambda i, tgt: (i, 0)),   # x tile (pipelined)
            pl.BlockSpec((tile, 1), lambda i, tgt: (i, 0)),   # fused target bias
            # TODO(synk): pipeline_mode=pl.Buffered(1) on the two resident specs would
            # free one H*Kp*2-byte copy of VMEM; kept default-buffered for robustness.
            pl.BlockSpec((H, Kp), lambda i, tgt: (0, 0)),     # W[noise]^T (resident)
            pl.BlockSpec((1, Kp), lambda i, tgt: (0, 0)),     # fused noise bias
            pl.BlockSpec(memory_space=pl.ANY),                # W stays in HBM
        ],
        out_specs=pl.BlockSpec((tile, 1), lambda i, tgt: (i, 0)),
        scratch_shapes=[
            pltpu.VMEM((tile, H), W.dtype),                   # gathered W[target] rows
            pltpu.SemaphoreType.DMA((1,)),
        ],
    )

    cost = pl.CostEstimate(
        flops=int(2 * BN * H * (Kp + 1)),
        transcendentals=int(2 * BN * (Kp + 1)),
        bytes_accessed=int(BN * H * (x_bytes + w_bytes) + 2 * H * Kp
                           + 8 * BN + 8 * Kp),
    )

    # TODO(synk): for reduction='elementwise_mean'/'sum' a lane-dense per-tile partial
    # sum output would avoid the masked (T,1) stores; output bytes are negligible here.
    per_row = pl.pallas_call(
        kernel,
        grid_spec=grid_spec,
        out_shape=jax.ShapeDtypeStruct((BN, 1), jnp.float32),
        compiler_params=pltpu.CompilerParams(
            dimension_semantics=("parallel",),   # safe: each grid step is self-contained
            vmem_limit_bytes=vmem_limit),
        cost_estimate=cost,
    )(tgt_pad, x2d, tbias, nwt, nbias, W)

    loss = per_row[:, 0].reshape(B, N)
    if reduction == 'elementwise_mean':
        return loss.mean()
    elif reduction == 'sum':
        return loss.sum()
    return loss


def nce_loss_reference(hidden, target, noise_idx, W, b, logprob_noise,
                       norm_term, noise_ratio, compute_dtype=jnp.bfloat16):
    """Pure-JAX reference mirroring the PyTorch module's math (nce, training).

    Target path is full f32 (the kernel DMAs f32 W rows); the noise path rounds x and
    W[noise] through `compute_dtype` to match the bf16-fed MXU (f32 accumulation).
    """
    B, N, _ = hidden.shape
    K = noise_idx.shape[-1]
    x32 = hidden.astype(jnp.float32)
    target_logit = (jnp.einsum('bnh,bnh->bn', W[target].astype(jnp.float32), x32)
                    + b[target] - norm_term)
    xk = hidden.astype(compute_dtype).astype(jnp.float32)
    Wk = W[noise_idx].astype(compute_dtype).astype(jnp.float32)
    noise_logit = (jnp.einsum('bnh,kh->bnk', xk, Wk)
                   + b[noise_idx] - norm_term)

    logit_model = jnp.concatenate([target_logit[..., None], noise_logit], axis=2)
    logit_noise = jnp.concatenate(
        [logprob_noise[target][..., None],
         jnp.broadcast_to(logprob_noise[noise_idx], (B, N, K))], axis=2)
    logit_true = logit_model - logit_noise - math.log(noise_ratio)
    label = jnp.zeros_like(logit_model).at[:, :, 0].set(1.0)
    bce = (jnp.maximum(logit_true, 0.0) - logit_true * label
           + jnp.log1p(jnp.exp(-jnp.abs(logit_true))))    # BCEWithLogits, 'none'
    return bce.sum(axis=2).mean()


if __name__ == "__main__":
    # small, deterministic problem sizes
    B, N, H = 2, 8, 32          # batch, seq len, hidden size
    V = 1000                    # vocabulary size
    K = 64                      # noise_ratio (k noise samples per real sample)

    key = jax.random.PRNGKey(0)
    k_h, k_w, k_b, k_t, k_n = jax.random.split(key, 5)

    # parameters of the index (linear) scoring module
    W = jax.random.normal(k_w, (V, H), dtype=jnp.float32) * 0.05
    b = jax.random.normal(k_b, (V,), dtype=jnp.float32) * 0.05

    # noise distribution (Zipf-like unigram counts) -> logprob_noise as in __init__
    noise = 1.0 / jnp.arange(1, V + 1, dtype=jnp.float32)
    probs = noise / noise.sum()
    probs = jnp.clip(probs, BACKOFF_PROB, None)
    renormed = probs / probs.sum()
    logprob_noise = jnp.log(renormed)
    norm_term = math.log(V)     # norm_term='auto'

    hidden = jax.random.normal(k_h, (B, N, H), dtype=jnp.float32)
    target = jax.random.randint(k_t, (B, N), 0, V, dtype=jnp.int32)

    # per_word=False -> one draw of K noise samples shared by all (b, n).
    # TODO(synk): AliasMultinomial table sampling replaced by jax.random.choice over the
    # same renormalized noise distribution (equivalent sampling law).
    noise_idx = jax.random.choice(k_n, V, shape=(K,), p=renormed).astype(jnp.int32)

    out = nce_loss_pallas(hidden, target, noise_idx, W, b, logprob_noise,
                          norm_term, K, reduction='elementwise_mean')
    out = jax.block_until_ready(out)

    ref = nce_loss_reference(hidden, target, noise_idx, W, b, logprob_noise,
                             norm_term, K)
    assert jnp.allclose(out, ref, rtol=1e-4, atol=1e-4), (out, ref)

    print("KERNEL_OK")
</pallas_src>

<mosaic_0001>
module attributes {stable_mosaic.version = 11 : i64} {
  func.func @_nce_kernel(%arg0: i32, %arg1: memref<16xi32, #tpu.memory_space<smem>>, %arg2: memref<16x32xf32, #tpu.memory_space<vmem>>, %arg3: memref<16x1xf32, #tpu.memory_space<vmem>>, %arg4: memref<32x128xbf16, #tpu.memory_space<vmem>>, %arg5: memref<1x128xf32, #tpu.memory_space<vmem>>, %arg6: memref<1000x32xf32, #tpu.memory_space<any>>, %arg7: memref<16x1xf32, #tpu.memory_space<vmem>>, %arg8: memref<16x32xf32, #tpu.memory_space<vmem>>, %arg9: memref<1x!tpu.dma_semaphore, #tpu.memory_space<semaphore_mem>>) attributes {dimension_semantics = [#tpu.dimension_semantics<parallel>], iteration_bounds = array<i64: 1>, scalar_prefetch = 1 : i64, scratch_operands = 2 : i64, tpu.core_type = #tpu.core_type<tc>, window_params = [{transform_indices = @transform_0, window_bounds = array<i64: 16, 32>}, {transform_indices = @transform_1, window_bounds = array<i64: 16, 1>}, {pipeline_mode = #tpu.pipeline_mode<synchronous>, transform_indices = @transform_2, window_bounds = array<i64: 32, 128>}, {pipeline_mode = #tpu.pipeline_mode<synchronous>, transform_indices = @transform_3, window_bounds = array<i64: 1, 128>}, {}, {transform_indices = @transform_5, window_bounds = array<i64: 16, 1>}]} {
    %c16_i32 = arith.constant 16 : i32
    %0 = arith.muli %arg0, %c16_i32 : i32
    %c0_i32 = arith.constant 0 : i32
    %c16_i32_0 = arith.constant 16 : i32
    %1 = arith.addi %c0_i32, %c16_i32_0 : i32
    %c1_i32 = arith.constant 1 : i32
    scf.for %arg10 = %c0_i32 to %1 step %c1_i32  : i32 {
      %35 = arith.addi %0, %arg10 : i32
      %36 = arith.index_cast %35 : i32 to index
      %37 = memref.load %arg1[%36] : memref<16xi32, #tpu.memory_space<smem>>
      %c0_i32_22 = arith.constant 0 : i32
      %c0_i32_23 = arith.constant 0 : i32
      %38 = tpu.memref_slice %arg6[%37, %c0_i32_23] : memref<1000x32xf32, #tpu.memory_space<any>> -> memref<1x32xf32, #tpu.memory_space<any>>
      %c0_i32_24 = arith.constant 0 : i32
      %39 = tpu.memref_slice %arg8[%arg10, %c0_i32_24] : memref<16x32xf32, #tpu.memory_space<vmem>> -> memref<1x32xf32, #tpu.memory_space<vmem>>
      %40 = tpu.memref_slice %arg9[%c0_i32_22] : memref<1x!tpu.dma_semaphore, #tpu.memory_space<semaphore_mem>> -> memref<1x!tpu.dma_semaphore, #tpu.memory_space<semaphore_mem>>
      %41 = tpu.memref_squeeze %40 : memref<1x!tpu.dma_semaphore, #tpu.memory_space<semaphore_mem>> -> memref<!tpu.dma_semaphore, #tpu.memory_space<semaphore_mem>>
      tpu.enqueue_dma source(%38 : memref<1x32xf32, #tpu.memory_space<any>>) target(%39 : memref<1x32xf32, #tpu.memory_space<vmem>>) target_semaphore(%41 : memref<!tpu.dma_semaphore, #tpu.memory_space<semaphore_mem>>)
    }
    %c16_i32_1 = arith.constant 16 : i32
    %c0 = arith.constant 0 : index
    %c0_2 = arith.constant 0 : index
    %2 = vector.load %arg2[%c0, %c0_2] : memref<16x32xf32, #tpu.memory_space<vmem>>, vector<16x32xf32>
    %3 = arith.truncf %2 : vector<16x32xf32> to vector<16x32xbf16>
    %c0_3 = arith.constant 0 : index
    %c0_4 = arith.constant 0 : index
    %4 = vector.load %arg4[%c0_3, %c0_4] : memref<32x128xbf16, #tpu.memory_space<vmem>>, vector<32x128xbf16>
    %cst = arith.constant dense<0.000000e+00> : vector<16x128xf32>
    %5 = tpu.matmul %3, %4, %cst {dimension_numbers = #tpu.dot_dimension_numbers<[1], [0], [0], [1], [0, 0, 1, 1], [], []>} : vector<16x32xbf16>, vector<32x128xbf16>, vector<16x128xf32> -> vector<16x128xf32>
    %c0_5 = arith.constant 0 : index
    %c0_6 = arith.constant 0 : index
    %6 = vector.load %arg5[%c0_5, %c0_6] : memref<1x128xf32, #tpu.memory_space<vmem>>, vector<1x128xf32>
    %7 = vector.broadcast %6 : vector<1x128xf32> to vector<16x128xf32>
    %8 = arith.addf %5, %7 : vector<16x128xf32>
    %c0_i32_7 = arith.constant 0 : i32
    %c16_i32_8 = arith.constant 16 : i32
    %9 = arith.addi %c0_i32_7, %c16_i32_8 : i32
    %c1_i32_9 = arith.constant 1 : i32
    scf.for %arg10 = %c0_i32_7 to %9 step %c1_i32_9  : i32 {
      %35 = arith.addi %0, %arg10 : i32
      %36 = arith.index_cast %35 : i32 to index
      %37 = memref.load %arg1[%36] : memref<16xi32, #tpu.memory_space<smem>>
      %c0_i32_22 = arith.constant 0 : i32
      %c0_i32_23 = arith.constant 0 : i32
      %38 = tpu.memref_slice %arg6[%37, %c0_i32_23] : memref<1000x32xf32, #tpu.memory_space<any>> -> memref<1x32xf32, #tpu.memory_space<any>>
      %c0_i32_24 = arith.constant 0 : i32
      %39 = tpu.memref_slice %arg8[%arg10, %c0_i32_24] : memref<16x32xf32, #tpu.memory_space<vmem>> -> memref<1x32xf32, #tpu.memory_space<vmem>>
      %40 = tpu.memref_slice %arg9[%c0_i32_22] : memref<1x!tpu.dma_semaphore, #tpu.memory_space<semaphore_mem>> -> memref<1x!tpu.dma_semaphore, #tpu.memory_space<semaphore_mem>>
      %41 = tpu.memref_squeeze %40 : memref<1x!tpu.dma_semaphore, #tpu.memory_space<semaphore_mem>> -> memref<!tpu.dma_semaphore, #tpu.memory_space<semaphore_mem>>
      tpu.wait_dma2 semaphore(%41 : memref<!tpu.dma_semaphore, #tpu.memory_space<semaphore_mem>>) src(%38 : memref<1x32xf32, #tpu.memory_space<any>>) dst(%39 : memref<1x32xf32, #tpu.memory_space<vmem>>)
    }
    %c16_i32_10 = arith.constant 16 : i32
    %c0_11 = arith.constant 0 : index
    %c0_12 = arith.constant 0 : index
    %10 = vector.load %arg8[%c0_11, %c0_12] : memref<16x32xf32, #tpu.memory_space<vmem>>, vector<16x32xf32>
    %11 = arith.mulf %10, %2 : vector<16x32xf32>
    %cst_13 = arith.constant dense<0.000000e+00> : vector<16xf32>
    %12 = vector.multi_reduction <add>, %11, %cst_13 [1] : vector<16x32xf32> to vector<16xf32>
    %13 = vector.shape_cast %12 : vector<16xf32> to vector<16x1xf32>
    %c0_14 = arith.constant 0 : index
    %c0_15 = arith.constant 0 : index
    %14 = vector.load %arg3[%c0_14, %c0_15] : memref<16x1xf32, #tpu.memory_space<vmem>>, vector<16x1xf32>
    %15 = arith.addf %13, %14 : vector<16x1xf32>
    %16 = tpu.iota {dimensions = array<i32: 1>} : vector<16x128xi32>
    %c64_i32 = arith.constant 64 : i32
    %17 = vector.broadcast %c64_i32 : i32 to vector<16x128xi32>
    %18 = arith.cmpi eq, %16, %17 : vector<16x128xi32>
    %cst_16 = arith.constant 0.000000e+00 : f32
    %19 = vector.broadcast %cst_16 : f32 to vector<16x1xf32>
    %20 = arith.subf %19, %15 : vector<16x1xf32>
    %21 = vector.shape_cast %20 : vector<16x1xf32> to vector<16x1xf32>
    %22 = vector.broadcast %21 : vector<16x1xf32> to vector<16x128xf32>
    %23 = arith.select %18, %22, %8 : vector<16x128xi1>, vector<16x128xf32>
    %cst_17 = arith.constant 0.000000e+00 : f32
    %24 = vector.broadcast %cst_17 : f32 to vector<16x128xf32>
    %25 = arith.maximumf %23, %24 : vector<16x128xf32>
    %26 = math.absf %23 : vector<16x128xf32>
    %cst_18 = arith.constant 0.000000e+00 : f32
    %27 = vector.broadcast %cst_18 : f32 to vector<16x128xf32>
    %28 = arith.subf %27, %26 : vector<16x128xf32>
    %29 = math.exp %28 : vector<16x128xf32>
    %30 = math.log1p %29 : vector<16x128xf32>
    %31 = arith.addf %25, %30 : vector<16x128xf32>
    %cst_19 = arith.constant dense<0.000000e+00> : vector<16xf32>
    %32 = vector.multi_reduction <add>, %31, %cst_19 [1] : vector<16x128xf32> to vector<16xf32>
    %33 = vector.shape_cast %32 : vector<16xf32> to vector<16x1xf32>
    %c0_20 = arith.constant 0 : index
    %c0_21 = arith.constant 0 : index
    %34 = vector.load %arg7[%c0_20, %c0_21] : memref<16x1xf32, #tpu.memory_space<vmem>>, vector<16x1xf32>
    tpu.vector_store %arg7[%c0_20, %c0_21], %33 {strides = array<i32>} : memref<16x1xf32, #tpu.memory_space<vmem>>, vector<16x1xf32>,
    return
  }
  func.func @transform_0(%arg0: i32, %arg1: memref<16xi32, #tpu.memory_space<smem>>) -> (i32, i32) {
    %c0_i32 = arith.constant 0 : i32
    %c0_i32_0 = arith.constant 0 : i32
    return %arg0, %c0_i32 : i32, i32
  }
  func.func @transform_1(%arg0: i32, %arg1: memref<16xi32, #tpu.memory_space<smem>>) -> (i32, i32) {
    %c0_i32 = arith.constant 0 : i32
    %c0_i32_0 = arith.constant 0 : i32
    return %arg0, %c0_i32 : i32, i32
  }
  func.func @transform_2(%arg0: i32, %arg1: memref<16xi32, #tpu.memory_space<smem>>) -> (i32, i32) {
    %c0_i32 = arith.constant 0 : i32
    %c0_i32_0 = arith.constant 0 : i32
    %c0_i32_1 = arith.constant 0 : i32
    return %c0_i32, %c0_i32_0 : i32, i32
  }
  func.func @transform_3(%arg0: i32, %arg1: memref<16xi32, #tpu.memory_space<smem>>) -> (i32, i32) {
    %c0_i32 = arith.constant 0 : i32
    %c0_i32_0 = arith.constant 0 : i32
    %c0_i32_1 = arith.constant 0 : i32
    return %c0_i32, %c0_i32_0 : i32, i32
  }
  func.func @transform_5(%arg0: i32, %arg1: memref<16xi32, #tpu.memory_space<smem>>) -> (i32, i32) {
    %c0_i32 = arith.constant 0 : i32
    %c0_i32_0 = arith.constant 0 : i32
    return %arg0, %c0_i32 : i32, i32
  }
}

</mosaic_0001>

<bundles_post_ra>
// kernel: tpu_custom_call.1
= control target key start
LH: loop header
LB: loop body
LE: loop exit
PB: predicated region body
PF: predicated region fallthrough
CT: control target
= control target key end

     0   :  { %s420_s0 = inlined_call_operand.vmem [shape: s32[16], index: 0, kind: input, shape index: {}]   ;;  %s421_s1 = inlined_call_operand.vmem [shape: f32[16,32], index: 1, kind: input, shape index: {}]   ;;  %s422_s2 = inlined_call_operand.vmem [shape: f32[16,1], index: 2, kind: input, shape index: {}]   ;;  %s423_s3 = inlined_call_operand.vmem [shape: bf16[32,128], index: 3, kind: input, shape index: {}]   ;;  %s424_s4 = inlined_call_operand.vmem [shape: f32[1,128], index: 4, kind: input, shape index: {}]   ;;  %s425_s5 = inlined_call_operand.vmem [shape: f32[1000,32], index: 5, kind: input, shape index: {}]   ;;  %s426_s6 = inlined_call_operand.vmem [shape: f32[16,1], index: 6, kind: output, shape index: {}]  }
   0x1   :  { %s11_s23 = sshll.u32 %s420_s0, 4  ;;  %s12_s23 = int_to_ptr.vmem [resolvable:$true] %s11_s23 }
   0x2   :  { %s313_s24 = scalar_lea.vmem %s12_s23, 16  ;;  %p318_p1 = scmp.lt.s32.totalorder %s12_s23, %s12_s23 }
   0x3   :  { %p314_p0 = scmp.ne.s32.totalorder %s12_s23, %s313_s24  ;;  %p319_p2 = scmp.lt.s32.totalorder %s313_s24, %s313_s24 }
   0x5   :  { %p320_p3 = por %p319_p2, %p318_p1 }
   0x7   :  { %p321_p4 = pnand %p320_p3, %p314_p0 }
   0x9   :  { %324 = shalt.err (!%p321_p4)  }
   0xa   :  { %s345_s25 = smov [#allocation5]  }
   0xb   :  { %14 = dma.vmem_to_smem %s12_s23, 16, %s345_s25, [#allocation4] }
   0xc   :  { %333 = dma.done.wait [#allocation4], 16 }
   0xd   :  { %334 = vsyncadd [#allocation4], 4294967280 }
   0xe   :  { %16 = sfence }
   0xf   :  { %s337_s26 = smov 0  }
  0x10 LB: > { %s34_s27 = sld [smem:[#allocation5 + %s339_s26]]  ;;  %s36_s30 = scalar_lea.vmem [#allocation2], %s339_s26  ;;  %s339_s26 = sphi %s337_s26, %s32_s26  }
  0x16   : > { %s35_s29 = scalar_lea.vmem %s425_s5, %s34_s27 }
  0x17   : > { %v55_v0 = vld [vmem:[%s35_s29] sm:$0x1] }
  0x18   : > { %56 = vst [vmem:[%s36_s30] sm:$0x1] %v55_v0 }
  0x19   : > { %82 = vsyncadd [#allocation3], 16  ;;  %s32_s26 = sadd.s32 1, %s339_s26  }
  0x1a   : > { %p29_p5 = scmp.ge.s32.totalorder %s32_s26, 16  }
  0x1b   :  { %v301_v1 = vld [vmem:[%s423_s3 + $0x8] sm:$0xff] (%p29_p5)   ;;  %v346_v2 = vmov (%p29_p5), 0.0   ;;  %v302_v3 = vld [vmem:[%s423_s3] sm:$0xff] (%p29_p5)   ;;  %vm347_vm0 = vmmov (%p29_p5), 0   ;;  %vm109_vm1 = vcmask (%p29_p5), 261120   ;;  %s341_s3 = smov (%p29_p5), 0  }
  0x1c   :  { %31 = sbr.rel (!%p29_p5) target bundleno = 16 (0x10), region = 92  ;;  %273 = vmatprep.subr.bf16.mxu0 (%p29_p5), %v346_v2  ;;  %277 = vmatprep.mubr.msk.bf16.mxu0 (%p29_p5), %vm347_vm0, %v346_v2  ;;  %v83_v4 = vld [vmem:[%s421_s1] sm:$0xff] (%p29_p5)  ;;  %v84_v5 = vld [vmem:[%s421_s1 + $0x8] sm:$0xff] (%p29_p5) }
  0x1d   :  { %274 = vmatpush3.bf16.msra.mxu0 (%p29_p5), %v301_v1  ;;  %v85_v6 = vpack.c.bf16 (%p29_p5), %v84_v5, %v83_v4  ;;  %v265_v7 = vld [vmem:[%s424_s4] ss:$0 sm:$0xff] (%p29_p5) }
  0x1e   :  { %275 = vmatprep.subr.bf16.mxu0 (%p29_p5), %v346_v2 }
  0x21   :  { %276 = vmatpush3.bf16.msra.mxu0 %v302_v3 }
  0x24   :  { %278 = vmatmul.mubr.msk.bf16.vlgmr.msra.gmra.mxu0 %vm109_vm1, %v85_v6 }
  0xe4   :  { %v147_v8 = vpop.f32.mrf.mxu0 }
  0xe5   :  { %v148_v9 = vadd.f32 %v265_v7, %v147_v8 }
  0xe6   :  { %v279_v10 = vpop.f32.mrf.mxu0 }
  0xe8   :  { %v150_v11 = vpop.f32.mrf.mxu0 }
  0xe9   :  { %v151_v12 = vadd.f32 %v265_v7, %v150_v11 }
  0xea   :  { %v280_v13 = vpop.f32.mrf.mxu0 }
  0xeb LB: > { %335 = dma.done.wait [#allocation3], 16  ;;  %s343_s3 = sphi %s341_s3, %s159_s3  }
  0xec   : > { %336 = vsyncadd [#allocation3], 4294967280  ;;  %s159_s3 = sadd.s32 1, %s343_s3  }
  0xed   : > { %p156_p6 = scmp.ge.s32.totalorder %s159_s3, 16  }
  0xee   :  { %v165_v14 = vld [vmem:[#allocation2] sm:$0xff] (%p156_p6)  ;;  %v166_v15 = vld [vmem:[#allocation2 + $0x8] sm:$0xff] (%p156_p6)  ;;  %v348_v20 = vmov (%p156_p6), 0   ;;  %v179_v29 = vlaneseq (%p156_p6)  ;;  %vm230_vm5 = vcmask (%p156_p6), 7168  }
  0xef   :  { %158 = sbr.rel (!%p156_p6) target bundleno = 235 (0xeb), region = 103  ;;  %v167_v16 = vmul.f32 (%p156_p6), %v165_v14, %v83_v4  ;;  %v168_v17 = vmul.f32 (%p156_p6), %v166_v15, %v84_v5  ;;  %303 = vset.pattern.permute.xlu1 (%p156_p6), %v348_v20  ;;  %304 = vset.pattern.permute.xlu0 (%p156_p6), %v348_v20  ;;  %v175_v21 = vld [vmem:[%s422_s2] sm:$0xff] (%p156_p6)  ;;  %v176_v24 = vld [vmem:[%s422_s2 + $0x8] sm:$0xff] (%p156_p6) }
  0xf0   :  { %v180_v30 = vand.u32 (%p156_p6), 127, %v179_v29 }
  0xf1   :  { %v169_v18 = vsel (%p156_p6), %vm109_vm1, %v167_v16, 0.0  ;;  %v172_v19 = vsel (%p156_p6), %vm109_vm1, %v168_v17, 0.0 }
  0xf2   :  { %170 = vadd.xlane.f32.xlu0 (%p156_p6), %v169_v18  ;;  %vm181_vm2 = vcmp.eq.s32.totalorder (%p156_p6), %v180_v30, 64 }
  0xf6   :  { %173 = vadd.xlane.f32.xlu0 %v172_v19 }
 0x17b   :  { %v171_v22 = vpop.xlane.xlu0 %170 }
 0x17c   :  { %v177_v23 = vadd.f32 %v175_v21, %v171_v22 }
 0x17e   :  { %v182_v25 = vsub.f32 0.0, %v177_v23 }
 0x17f   :  { %v174_v26 = vpop.xlane.xlu0 %173 }
 0x180   :  { %v178_v27 = vadd.f32 %v176_v24, %v174_v26  ;;  %186 = vperm.xlu1 %303, %v182_v25  }
 0x182   :  { %v183_v28 = vsub.f32 0.0, %v178_v27 }
 0x184   :  { %191 = vperm.xlu1 %303, %v183_v28  }
 0x1fb   :  { %v187_v31 = vpop.permute.xlu1 %186 }
 0x1fc   :  { %v194_v32 = vsel %vm181_vm2, %v187_v31, %v148_v9 }
 0x1fd   :  { %v198_v33 = vand.u32 2147483647, %v194_v32  ;;  %v196_v53 = vmax.f32 %v194_v32, 0.0 }
 0x1ff   :  { %v200_v34 = vsub.f32 0.0, %v198_v33  ;;  %v192_v35 = vpop.permute.xlu1 %191 }
 0x200   :  { %v195_v36 = vsel %vm181_vm2, %v192_v35, %v151_v12 }
 0x201   :  { %v202_v37 = vmul.f32 1.442695, %v200_v34  ;;  %v199_v38 = vand.u32 2147483647, %v195_v36  ;;  %v197_v60 = vmax.f32 %v195_v36, 0.0 }
 0x203   :  { %305 = vpow2.f32 %v202_v37  ;;  %v201_v39 = vsub.f32 0.0, %v199_v38 }
 0x205   :  { %v204_v40 = vmul.f32 1.442695, %v201_v39 }
 0x207   :  { %307 = vpow2.f32 %v204_v40 }
 0x210   :  { %v306_v41 = vpop.eup %305 }
 0x211   :  { %v206_v42 = vadd.f32 1.0, %v306_v41  ;;  %v209_v45 = vmul.f32 -0.5, %v306_v41  ;;  %v212_v48 = vand.u32 2147483647, %v306_v41 }
 0x213   :  { %309 = vlog2.f32 %v206_v42  ;;  %v210_v46 = vadd.f32 1.0, %v209_v45  ;;  %vm213_vm3 = vcmp.lt.f32.partialorder %v212_v48, 0.0004427343 }
 0x214   :  { %v308_v43 = vpop.eup %307 }
 0x215   :  { %v215_v44 = vadd.f32 1.0, %v308_v43  ;;  %v218_v47 = vmul.f32 -0.5, %v308_v43  ;;  %v211_v51 = vmul.f32 %v306_v41, %v210_v46  ;;  %v221_v54 = vand.u32 2147483647, %v308_v43 }
 0x217   :  { %311 = vlog2.f32 %v215_v44  ;;  %v219_v52 = vadd.f32 1.0, %v218_v47  ;;  %vm222_vm4 = vcmp.lt.f32.partialorder %v221_v54, 0.0004427343 }
 0x219   :  { %v220_v59 = vmul.f32 %v308_v43, %v219_v52 }
 0x220   :  { %v310_v49 = vpop.eup %309 }
 0x221   :  { %v208_v50 = vmul.f32 0.6931472, %v310_v49 }
 0x223   :  { %v214_v55 = vsel %vm213_vm3, %v211_v51, %v208_v50 }
 0x224   :  { %v312_v56 = vpop.eup %311  ;;  %v224_v57 = vadd.f32 %v214_v55, %v196_v53 }
 0x225   :  { %v217_v58 = vmul.f32 0.6931472, %v312_v56 }
 0x226   :  { %226 = vadd.xlane.f32.xlu0 %v224_v57 }
 0x227   :  { %v223_v61 = vsel %vm222_vm4, %v220_v59, %v217_v58 }
 0x228   :  { %v225_v62 = vadd.f32 %v223_v61, %v197_v60 }
 0x22a   :  { %228 = vadd.xlane.f32.xlu1 %v225_v62 }
 0x2af   :  { %v227_v63 = vpop.xlane.xlu0 %226 }
 0x2b0   :  { %231 = vst.msk [vmem:[%s426_s6] sm:$0xff] %vm230_vm5, %v227_v63 }
 0x2b3   :  { %v229_v0 = vpop.xlane.xlu1 %228 }
 0x2b4   :  { %232 = vst.msk [vmem:[%s426_s6 + $0x8] sm:$0xff] %vm230_vm5, %v229_v0 }
 0x2b5   :  { %237 = vsyncmov [#allocation3] }
 0x2b8   :  { %s238_s21 = vpop.sfrf %237 }
 0x2b9   :  { %p269_p7 = scmp.ne.s32.totalorder %s238_s21, 0 }
 0x2bb   :  { %242 = shalt.err (%p269_p7)  }

</bundles_post_ra>
